<compile_context>
chip_gen: v6e
topology: v6e:2x2x1
jax: 0.10.0
libtpu: 0.0.40
codegen_flags: <defaults>
</compile_context>

<pallas_src>
import functools

import jax
import jax.numpy as jnp
from jax import lax
from jax.experimental import pallas as pl
from jax.experimental.pallas import tpu as pltpu


def _round_up(x, m):
    return ((x + m - 1) // m) * m


# --------------------- resident-weight kernel (main path) ---------------------

def highway_resident_kernel(x_ref, w_ref, b_ref, o_ref, *, num_layers, size):
    """One batch tile; all L fused weights are VMEM-resident.

    x_ref : (tm, size)          input tile
    w_ref : (L, size, 3*size)   fused [Wn | Wl | Wg] weights (bf16 or f32)
    b_ref : (L, 1, 3*size)      fused biases (f32)
    o_ref : (tm, size)          output tile
    """
    x0 = x_ref[...].astype(jnp.float32)

    def body(layer, x):
        # Single fused matmul per layer: bf16 operands, f32 accumulation.
        y = jnp.dot(x.astype(w_ref.dtype), w_ref[layer],
                    preferred_element_type=jnp.float32) + b_ref[layer]
        n = jnp.maximum(y[:, :size], 0.0)          # f = ReLU
        lin = y[:, size:2 * size]
        g = jax.nn.sigmoid(y[:, 2 * size:])
        return lin + g * (n - lin)                 # == g*n + (1-g)*lin

    x_out = lax.fori_loop(0, num_layers, body, x0, unroll=num_layers <= 8)
    o_ref[...] = x_out.astype(o_ref.dtype)


# ------------------ streamed-weight kernel (large-model path) -----------------

def highway_streamed_kernel(x_ref, w_ref, b_ref, o_ref, x_scr, *, size):
    """grid = (batch_tiles, L); one layer's fused weights per step."""
    layer = pl.program_id(1)
    last = pl.num_programs(1) - 1

    @pl.when(layer == 0)
    def _():
        x_scr[...] = x_ref[...].astype(jnp.float32)

    x = x_scr[...]
    y = jnp.dot(x.astype(w_ref.dtype), w_ref[0],
                preferred_element_type=jnp.float32) + b_ref[0]
    n = jnp.maximum(y[:, :size], 0.0)
    lin = y[:, size:2 * size]
    g = jax.nn.sigmoid(y[:, 2 * size:])
    x_new = lin + g * (n - lin)

    @pl.when(layer < last)          # the last-layer scratch store is dead
    def _():
        x_scr[...] = x_new

    @pl.when(layer == last)
    def _():
        o_ref[...] = x_new.astype(o_ref.dtype)


# ----------------------------------- wrapper ----------------------------------

def highway_forward(x, w_fused, b_fused, *, batch_tile=None,
                    resident_weight_budget=24 * 1024 * 1024):
    """x: [B, size]; w_fused: [L, size_pad, 3*size_pad]; b_fused: [L, 1, 3*size_pad]."""
    B, size = x.shape
    L, size_pad, size3 = w_fused.shape
    assert size3 == 3 * size_pad
    assert b_fused.shape == (L, 1, 3 * size_pad)
    assert size <= size_pad and size_pad % 128 == 0

    # Resident if a (conservatively double-buffered) copy of all layer weights
    # fits the v7x-safe budget; otherwise stream one layer per grid step.
    weight_bytes = int(w_fused.size) * w_fused.dtype.itemsize
    resident = 2 * weight_bytes <= resident_weight_budget

    if batch_tile is None:
        batch_tile = 128 if resident else 512   # streamed: raise FLOP/weight-byte
    tm = min(batch_tile, _round_up(B, 8))       # sublane-aligned tile
    padded_b = _round_up(B, tm)

    if padded_b != B or size_pad != size:
        x_in = jnp.zeros((padded_b, size_pad), x.dtype).at[:B, :size].set(x)
    else:
        x_in = x

    # VMEM budget from actual buffer sizes (double-buffered), v7x-friendly cap.
    l_blk = L if resident else 1
    need = (2 * tm * size_pad * x.dtype.itemsize            # x blocks
            + 2 * tm * size_pad * x.dtype.itemsize          # out blocks
            + 2 * l_blk * size_pad * 3 * size_pad * w_fused.dtype.itemsize
            + 2 * l_blk * 3 * size_pad * b_fused.dtype.itemsize
            + (0 if resident else tm * size_pad * 4))       # x_scr scratch
    vmem_limit = min(max(int(need * 1.5) + (1 << 20), 4 << 20), 64 << 20)

    if resident:
        kernel = functools.partial(highway_resident_kernel,
                                   num_layers=L, size=size_pad)
        out = pl.pallas_call(
            kernel,
            out_shape=jax.ShapeDtypeStruct((padded_b, size_pad), x.dtype),
            grid_spec=pltpu.PrefetchScalarGridSpec(
                num_scalar_prefetch=0,
                grid=(padded_b // tm,),
                in_specs=[
                    pl.BlockSpec((tm, size_pad), lambda i: (i, 0)),
                    pl.BlockSpec((L, size_pad, 3 * size_pad),
                                 lambda i: (0, 0, 0)),       # resident weights
                    pl.BlockSpec((L, 1, 3 * size_pad),
                                 lambda i: (0, 0, 0)),       # resident biases
                ],
                out_specs=pl.BlockSpec((tm, size_pad), lambda i: (i, 0)),
            ),
            compiler_params=pltpu.CompilerParams(
                dimension_semantics=("parallel",),
                vmem_limit_bytes=vmem_limit,
            ),
        )(x_in, w_fused, b_fused)
    else:
        kernel = functools.partial(highway_streamed_kernel, size=size_pad)
        out = pl.pallas_call(
            kernel,
            out_shape=jax.ShapeDtypeStruct((padded_b, size_pad), x.dtype),
            grid_spec=pltpu.PrefetchScalarGridSpec(
                num_scalar_prefetch=0,
                grid=(padded_b // tm, L),
                in_specs=[
                    pl.BlockSpec((tm, size_pad), lambda i, l: (i, 0)),
                    pl.BlockSpec((1, size_pad, 3 * size_pad),
                                 lambda i, l: (l, 0, 0)),
                    pl.BlockSpec((1, 1, 3 * size_pad),
                                 lambda i, l: (l, 0, 0)),
                ],
                out_specs=pl.BlockSpec((tm, size_pad), lambda i, l: (i, 0)),
                scratch_shapes=[pltpu.VMEM((tm, size_pad), jnp.float32)],
            ),
            compiler_params=pltpu.CompilerParams(
                dimension_semantics=("parallel", "arbitrary"),
                vmem_limit_bytes=vmem_limit,
            ),
        )(x_in, w_fused, b_fused)

    if padded_b != B or size_pad != size:
        out = out[:B, :size]
    return out


# ------------------------------ params / reference ----------------------------

def fuse_params(wn, bn, wl, bl, wg, bg, *, weight_dtype=jnp.bfloat16):
    """Concatenate [Wn|Wl|Wg] along the output axis and pad features to 128."""
    L, size, _ = wn.shape
    size_pad = _round_up(size, 128)
    pw, pb = size_pad - size, size_pad - size

    def pad_w(w):
        return jnp.pad(w, ((0, 0), (0, pw), (0, pw)))

    def pad_b(b):
        return jnp.pad(b, ((0, 0), (0, 0), (0, pb)))

    w_fused = jnp.concatenate([pad_w(wn), pad_w(wl), pad_w(wg)], axis=-1)
    b_fused = jnp.concatenate([pad_b(bn), pad_b(bl), pad_b(bg)], axis=-1)
    return w_fused.astype(weight_dtype), b_fused.astype(jnp.float32)


def highway_reference(x, wn, bn, wl, bl, wg, bg):
    """Pure-JAX reference mirroring the PyTorch forward (f = ReLU)."""
    x = x.astype(jnp.float32)
    L = wn.shape[0]
    for layer in range(L):
        g = jax.nn.sigmoid(x @ wg[layer] + bg[layer])
        n = jax.nn.relu(x @ wn[layer] + bn[layer])
        lin = x @ wl[layer] + bl[layer]
        x = g * n + (1.0 - g) * lin
    return x


def init_params(key, size, num_layers):
    """Deterministic init matching nn.Linear's U(-1/sqrt(size), 1/sqrt(size))."""
    bound = 1.0 / jnp.sqrt(size)
    keys = jax.random.split(key, 6)

    def w(k):
        return jax.random.uniform(k, (num_layers, size, size),
                                  jnp.float32, -bound, bound)

    def b(k):
        return jax.random.uniform(k, (num_layers, 1, size),
                                  jnp.float32, -bound, bound)

    return (w(keys[0]), b(keys[1]),   # nonlinear
            w(keys[2]), b(keys[3]),   # linear
            w(keys[4]), b(keys[5]))   # gate


# TODO(synk): the PyTorch module takes an arbitrary callable `f`; this port
# hard-codes f = ReLU (swap jnp.maximum for jnp.tanh etc. if the config differs).

if __name__ == "__main__":
    batch, size, num_layers = 16, 128, 2

    key = jax.random.PRNGKey(0)
    k_x, k_p = jax.random.split(key)
    x = jax.random.normal(k_x, (batch, size), jnp.float32)
    wn, bn, wl, bl, wg, bg = init_params(k_p, size, num_layers)

    ref = highway_reference(x, wn, bn, wl, bl, wg, bg)

    # 1) Exact-precision path (f32 weights, resident, in-kernel layer loop).
    w32, b32 = fuse_params(wn, bn, wl, bl, wg, bg, weight_dtype=jnp.float32)
    out32 = jax.block_until_ready(highway_forward(x, w32, b32))
    assert out32.shape == (batch, size)
    assert jnp.allclose(out32, ref, atol=1e-5, rtol=1e-5)

    # 2) Deployment path (bf16 weights, f32 accumulation): looser tolerance.
    wbf, bbf = fuse_params(wn, bn, wl, bl, wg, bg, weight_dtype=jnp.bfloat16)
    outbf = jax.block_until_ready(highway_forward(x, wbf, bbf))
    assert outbf.shape == (batch, size)
    assert jnp.allclose(outbf, ref, atol=2e-2, rtol=2e-2)

    # 3) Streamed-weight fallback path (forced), exercised for correctness.
    outst = jax.block_until_ready(
        highway_forward(x, w32, b32, resident_weight_budget=0))
    assert jnp.allclose(outst, ref, atol=1e-5, rtol=1e-5)

    print("KERNEL_OK")
</pallas_src>

<mosaic_0001>
module attributes {stable_mosaic.version = 11 : i64} {
  func.func @highway_resident_kernel(%arg0: i32, %arg1: memref<16x128xf32, #tpu.memory_space<vmem>>, %arg2: memref<2x128x384xf32, #tpu.memory_space<vmem>>, %arg3: memref<2x1x384xf32, #tpu.memory_space<vmem>>, %arg4: memref<16x128xf32, #tpu.memory_space<vmem>>) attributes {dimension_semantics = [#tpu.dimension_semantics<parallel>], iteration_bounds = array<i64: 1>, scalar_prefetch = 0 : i64, scratch_operands = 0 : i64, tpu.core_type = #tpu.core_type<tc>, window_params = [{transform_indices = @transform_0, window_bounds = array<i64: 16, 128>}, {pipeline_mode = #tpu.pipeline_mode<synchronous>, transform_indices = @transform_1, window_bounds = array<i64: 2, 128, 384>}, {pipeline_mode = #tpu.pipeline_mode<synchronous>, transform_indices = @transform_2, window_bounds = array<i64: 2, 1, 384>}, {transform_indices = @transform_3, window_bounds = array<i64: 16, 128>}]} {
    %c0 = arith.constant 0 : index
    %c0_0 = arith.constant 0 : index
    %0 = vector.load %arg1[%c0, %c0_0] : memref<16x128xf32, #tpu.memory_space<vmem>>, vector<16x128xf32>
    %c0_i32 = arith.constant 0 : i32
    %1 = arith.index_cast %c0_i32 : i32 to index
    %c0_1 = arith.constant 0 : index
    %c0_2 = arith.constant 0 : index
    %2 = vector.load %arg2[%1, %c0_1, %c0_2] : memref<2x128x384xf32, #tpu.memory_space<vmem>>, vector<1x128x384xf32>
    %3 = vector.shape_cast %2 : vector<1x128x384xf32> to vector<128x384xf32>
    %cst = arith.constant dense<0.000000e+00> : vector<16x384xf32>
    %4 = tpu.matmul %0, %3, %cst {dimension_numbers = #tpu.dot_dimension_numbers<[1], [0], [0], [1], [0, 0, 1, 1], [], []>} : vector<16x128xf32>, vector<128x384xf32>, vector<16x384xf32> -> vector<16x384xf32>
    %5 = arith.index_cast %c0_i32 : i32 to index
    %c0_3 = arith.constant 0 : index
    %c0_4 = arith.constant 0 : index
    %6 = vector.load %arg3[%5, %c0_3, %c0_4] : memref<2x1x384xf32, #tpu.memory_space<vmem>>, vector<1x1x384xf32>
    %7 = vector.shape_cast %6 : vector<1x1x384xf32> to vector<1x384xf32>
    %8 = vector.broadcast %7 : vector<1x384xf32> to vector<16x384xf32>
    %9 = arith.addf %4, %8 : vector<16x384xf32>
    %10 = vector.extract_strided_slice %9 {offsets = [0, 0], sizes = [16, 128], strides = [1, 1]} : vector<16x384xf32> to vector<16x128xf32>
    %cst_5 = arith.constant 0.000000e+00 : f32
    %11 = vector.broadcast %cst_5 : f32 to vector<16x128xf32>
    %12 = arith.maximumf %10, %11 : vector<16x128xf32>
    %13 = vector.extract_strided_slice %9 {offsets = [0, 128], sizes = [16, 128], strides = [1, 1]} : vector<16x384xf32> to vector<16x128xf32>
    %14 = vector.extract_strided_slice %9 {offsets = [0, 256], sizes = [16, 128], strides = [1, 1]} : vector<16x384xf32> to vector<16x128xf32>
    %15 = arith.negf %14 : vector<16x128xf32>
    %16 = math.exp %15 : vector<16x128xf32>
    %cst_6 = arith.constant 1.000000e+00 : f32
    %17 = vector.broadcast %cst_6 : f32 to vector<16x128xf32>
    %18 = arith.addf %17, %16 : vector<16x128xf32>
    %19 = arith.divf %17, %18 : vector<16x128xf32>
    %20 = arith.subf %12, %13 : vector<16x128xf32>
    %21 = arith.mulf %19, %20 : vector<16x128xf32>
    %22 = arith.addf %13, %21 : vector<16x128xf32>
    %c1_i32 = arith.constant 1 : i32
    %23 = arith.index_cast %c1_i32 : i32 to index
    %c0_7 = arith.constant 0 : index
    %c0_8 = arith.constant 0 : index
    %24 = vector.load %arg2[%23, %c0_7, %c0_8] : memref<2x128x384xf32, #tpu.memory_space<vmem>>, vector<1x128x384xf32>
    %25 = vector.shape_cast %24 : vector<1x128x384xf32> to vector<128x384xf32>
    %cst_9 = arith.constant dense<0.000000e+00> : vector<16x384xf32>
    %26 = tpu.matmul %22, %25, %cst_9 {dimension_numbers = #tpu.dot_dimension_numbers<[1], [0], [0], [1], [0, 0, 1, 1], [], []>} : vector<16x128xf32>, vector<128x384xf32>, vector<16x384xf32> -> vector<16x384xf32>
    %27 = arith.index_cast %c1_i32 : i32 to index
    %c0_10 = arith.constant 0 : index
    %c0_11 = arith.constant 0 : index
    %28 = vector.load %arg3[%27, %c0_10, %c0_11] : memref<2x1x384xf32, #tpu.memory_space<vmem>>, vector<1x1x384xf32>
    %29 = vector.shape_cast %28 : vector<1x1x384xf32> to vector<1x384xf32>
    %30 = vector.broadcast %29 : vector<1x384xf32> to vector<16x384xf32>
    %31 = arith.addf %26, %30 : vector<16x384xf32>
    %32 = vector.extract_strided_slice %31 {offsets = [0, 0], sizes = [16, 128], strides = [1, 1]} : vector<16x384xf32> to vector<16x128xf32>
    %cst_12 = arith.constant 0.000000e+00 : f32
    %33 = vector.broadcast %cst_12 : f32 to vector<16x128xf32>
    %34 = arith.maximumf %32, %33 : vector<16x128xf32>
    %35 = vector.extract_strided_slice %31 {offsets = [0, 128], sizes = [16, 128], strides = [1, 1]} : vector<16x384xf32> to vector<16x128xf32>
    %36 = vector.extract_strided_slice %31 {offsets = [0, 256], sizes = [16, 128], strides = [1, 1]} : vector<16x384xf32> to vector<16x128xf32>
    %37 = arith.negf %36 : vector<16x128xf32>
    %38 = math.exp %37 : vector<16x128xf32>
    %cst_13 = arith.constant 1.000000e+00 : f32
    %39 = vector.broadcast %cst_13 : f32 to vector<16x128xf32>
    %40 = arith.addf %39, %38 : vector<16x128xf32>
    %41 = arith.divf %39, %40 : vector<16x128xf32>
    %42 = arith.subf %34, %35 : vector<16x128xf32>
    %43 = arith.mulf %41, %42 : vector<16x128xf32>
    %44 = arith.addf %35, %43 : vector<16x128xf32>
    %c2_i32 = arith.constant 2 : i32
    %c0_14 = arith.constant 0 : index
    %c0_15 = arith.constant 0 : index
    %45 = vector.load %arg4[%c0_14, %c0_15] : memref<16x128xf32, #tpu.memory_space<vmem>>, vector<16x128xf32>
    tpu.vector_store %arg4[%c0_14, %c0_15], %44 {strides = array<i32>} : memref<16x128xf32, #tpu.memory_space<vmem>>, vector<16x128xf32>,
    return
  }
  func.func @transform_0(%arg0: i32) -> (i32, i32) {
    %c0_i32 = arith.constant 0 : i32
    %c0_i32_0 = arith.constant 0 : i32
    return %arg0, %c0_i32 : i32, i32
  }
  func.func @transform_1(%arg0: i32) -> (i32, i32, i32) {
    %c0_i32 = arith.constant 0 : i32
    %c0_i32_0 = arith.constant 0 : i32
    %c0_i32_1 = arith.constant 0 : i32
    %c0_i32_2 = arith.constant 0 : i32
    return %c0_i32, %c0_i32_0, %c0_i32_1 : i32, i32, i32
  }
  func.func @transform_2(%arg0: i32) -> (i32, i32, i32) {
    %c0_i32 = arith.constant 0 : i32
    %c0_i32_0 = arith.constant 0 : i32
    %c0_i32_1 = arith.constant 0 : i32
    %c0_i32_2 = arith.constant 0 : i32
    return %c0_i32, %c0_i32_0, %c0_i32_1 : i32, i32, i32
  }
  func.func @transform_3(%arg0: i32) -> (i32, i32) {
    %c0_i32 = arith.constant 0 : i32
    %c0_i32_0 = arith.constant 0 : i32
    return %arg0, %c0_i32 : i32, i32
  }
}

</mosaic_0001>

<bundles_post_ra>
// kernel: tpu_custom_call.1
= control target key start
LH: loop header
LB: loop body
LE: loop exit
PB: predicated region body
PF: predicated region fallthrough
CT: control target
= control target key end

     0   :  { %8 = vsyncpa [#allocation3], 0  ;;  %s839_s0 = inlined_call_operand.hbm [shape: f32[16,128], index: 0, kind: input, shape index: {}]   ;;  %s840_s1 = inlined_call_operand.hbm [shape: f32[2,128,384], index: 1, kind: input, shape index: {}]   ;;  %s841_s2 = inlined_call_operand.hbm [shape: f32[2,1,384], index: 2, kind: input, shape index: {}]   ;;  %s842_s3 = inlined_call_operand.hbm [shape: f32[16,128], index: 3, kind: output, shape index: {}]  }
   0x1   :  { %9 = vsyncpa [#allocation6], 0 }
   0x2   :  { %10 = vsyncpa [#allocation4], 0  ;;  %s777_s12 = smov [#allocation5]  }
   0x3   :  { %s28_s13 = sshll.u32 %s777_s12, 4  ;;  %s29_s13 = int_to_ptr.vmem [resolvable:$true] %s28_s13 }
   0x4   :  { %s699_s14 = scalar_lea.vmem %s29_s13, 12288  ;;  %p704_p1 = scmp.lt.s32.totalorder %s29_s13, %s29_s13 }
   0x5   :  { %p700_p0 = scmp.ne.s32.totalorder %s29_s13, %s699_s14  ;;  %p705_p2 = scmp.lt.s32.totalorder %s699_s14, %s699_s14 }
   0x7   :  { %p706_p3 = por %p705_p2, %p704_p1 }
   0x9   :  { %p707_p4 = pnand %p706_p3, %p700_p0 }
   0xb   :  { %710 = shalt.err (!%p707_p4)
}
   0xc   :  { %s778_s15 = smov 384   ;;  %s779_s16 = smov 24  }
   0xd   :  { %34 = dma.hbm_to_vmem [thread:$0]  %s840_s1, 12288, %s29_s13, [#allocation6], %s778_s15, %s778_s15, %s779_s16  }
   0xe   :  { %s780_s19 = smov [#allocation2]  }
   0xf   :  { %s16_s20 = sshll.u32 %s780_s19, 4  ;;  %s17_s20 = int_to_ptr.vmem [resolvable:$true] %s16_s20 }
  0x10   :  { %s719_s21 = scalar_lea.vmem %s17_s20, 256  ;;  %p724_p6 = scmp.lt.s32.totalorder %s17_s20, %s17_s20 }
  0x11   :  { %p720_p5 = scmp.ne.s32.totalorder %s17_s20, %s719_s21  ;;  %p725_p7 = scmp.lt.s32.totalorder %s719_s21, %s719_s21 }
  0x13   :  { %p726_p8 = por %p725_p7, %p724_p6 }
  0x15   :  { %p727_p9 = pnand %p726_p8, %p720_p5 }
  0x17   :  { %730 = shalt.err (!%p727_p9)
}
  0x18   :  { %s781_s22 = smov 128   ;;  %s782_s23 = smov 8  }
  0x19   :  { %22 = dma.hbm_to_vmem [thread:$0]  %s839_s0, 256, %s17_s20, [#allocation3], %s781_s22, %s781_s22, %s782_s23  }
  0x1a   :  { %s783_s1 = smov [#allocation7]  }
  0x1b   :  { %s40_s26 = sshll.u32 %s783_s1, 4  ;;  %s41_s26 = int_to_ptr.vmem [resolvable:$true] %s40_s26 }
  0x1c   :  { %s739_s27 = scalar_lea.vmem %s41_s26, 96  ;;  %p744_p11 = scmp.lt.s32.totalorder %s41_s26, %s41_s26 }
  0x1d   :  { %p740_p10 = scmp.ne.s32.totalorder %s41_s26, %s739_s27  ;;  %p745_p12 = scmp.lt.s32.totalorder %s739_s27, %s739_s27 }
  0x1f   :  { %p746_p13 = por %p745_p12, %p744_p11 }
  0x21   :  { %p747_p0 = pnand %p746_p13, %p740_p10 }
  0x23   :  { %750 = shalt.err (!%p747_p0)
}
  0x24   :  { %s784_s28 = smov 48   ;;  %s785_s29 = smov 3  }
  0x25   :  { %46 = dma.hbm_to_vmem [thread:$0]  %s841_s2, 96, %s41_s26, [#allocation6], %s784_s28, %s784_s28, %s785_s29  }
  0x26   :  { %771 = dma.done.wait [#allocation3], 256  }
  0x27   :  { %772 = vsyncadd [#allocation3], 4294967040 }
  0x28   :  { %773 = dma.done.wait [#allocation6], 12384  }
  0x29   :  { %774 = vsyncadd [#allocation6], 4294954912  ;;  %v786_v0 = vmov 0.0   ;;  %v105_v1 = vld [vmem:[#allocation5 + $0x178] sm:$0xff]  ;;  %v102_v2 = vld [vmem:[#allocation5 + $0x160] sm:$0xff]  ;;  %s787_s0 = smov [#allocation8]  }
  0x2a   :  { %187 = vmatprep.mubr.f32.mxu0 %v786_v0  ;;  %594 = vmatprep.subr.mxu1 %v105_v1  ;;  %v99_v3 = vld [vmem:[#allocation5 + $0x148] sm:$0xff]  ;;  %v96_v4 = vld [vmem:[#allocation5 + $0x130] sm:$0xff]  ;;  %v101_v7 = vld [vmem:[#allocation5 + $0x158] sm:$0xff]  ;;  %s541_s2 = sshll.u32 %s787_s0, 4  ;;  %s542_s2 = int_to_ptr.vmem [resolvable:$true] %s541_s2 }
  0x2b   :  { %595 = vmatpush3.msra.mxu1 %v105_v1  ;;  %v104_v5 = vld [vmem:[#allocation5 + $0x170] sm:$0xff]  ;;  %v103_v6 = vld [vmem:[#allocation5 + $0x168] sm:$0xff]  ;;  %v93_v9 = vld [vmem:[#allocation5 + $0x118] sm:$0xff]  ;;  %s751_s5 = scalar_lea.vmem %s542_s2, 256  ;;  %p756_p2 = scmp.lt.s32.totalorder %s542_s2, %s542_s2 }
  0x2c   :  { %596 = vmatprep.subr.mxu1 %v102_v2  ;;  %123 = vmatprep.subr.mxu0 %v104_v5  ;;  %v100_v8 = vld [vmem:[#allocation5 + $0x150] sm:$0xff]  ;;  %v98_v10 = vld [vmem:[#allocation5 + $0x140] sm:$0xff]  ;;  %v97_v11 = vld [vmem:[#allocation5 + $0x138] sm:$0xff]  ;;  %p752_p1 = scmp.ne.s32.totalorder %s542_s2, %s751_s5  ;;  %p757_p3 = scmp.lt.s32.totalorder %s751_s5, %s751_s5 }
  0x2d   :  { %597 = vmatpush3.msra.mxu1 %v102_v2  ;;  %124 = vmatpush1.msra.mxu0 %v103_v6  ;;  %v90_v12 = vld [vmem:[#allocation5 + $0x100] sm:$0xff]  ;;  %v95_v13 = vld [vmem:[#allocation5 + $0x128] sm:$0xff]  ;;  %v821_v16 = vld [vmem:[#allocation2] sm:$0xff] }
  0x2e   :  { %598 = vmatprep.subr.mxu1 %v99_v3  ;;  %125 = vmatprep.subr.mxu0 %v101_v7  ;;  %v94_v14 = vld [vmem:[#allocation5 + $0x120] sm:$0xff]  ;;  %v87_v15 = vld [vmem:[#allocation5 + $0xe8] sm:$0xff]  ;;  %v92_v17 = vld [vmem:[#allocation5 + $0x110] sm:$0xff]  ;;  %p758_p4 = por %p757_p3, %p756_p2 }
  0x2f   :  { %599 = vmatpush3.msra.mxu1 %v99_v3  ;;  %126 = vmatpush1.msra.mxu0 %v100_v8  ;;  %v84_v18 = vld [vmem:[#allocation5 + $0xd0] sm:$0xff]  ;;  %v91_v19 = vld [vmem:[#allocation5 + $0x108] sm:$0xff]  ;;  %v89_v20 = vld [vmem:[#allocation5 + $0xf8] sm:$0xff] }
  0x30   :  { %600 = vmatprep.subr.mxu1 %v96_v4  ;;  %127 = vmatprep.subr.mxu0 %v98_v10  ;;  %v81_v21 = vld [vmem:[#allocation5 + $0xb8] sm:$0xff]  ;;  %v88_v22 = vld [vmem:[#allocation5 + $0xf0] sm:$0xff]  ;;  %v86_v23 = vld [vmem:[#allocation5 + $0xe0] sm:$0xff]  ;;  %p759_p5 = pnand %p758_p4, %p752_p1 }
  0x31   :  { %601 = vmatpush3.msra.mxu1 %v96_v4  ;;  %128 = vmatpush1.msra.mxu0 %v97_v11  ;;  %v78_v24 = vld [vmem:[#allocation5 + $0xa0] sm:$0xff]  ;;  %v85_v25 = vld [vmem:[#allocation5 + $0xd8] sm:$0xff]  ;;  %v83_v26 = vld [vmem:[#allocation5 + $0xc8] sm:$0xff] }
  0x32   :  { %602 = vmatprep.subr.mxu1 %v93_v9  ;;  %129 = vmatprep.subr.mxu0 %v95_v13  ;;  %v75_v27 = vld [vmem:[#allocation5 + $0x88] sm:$0xff]  ;;  %v82_v28 = vld [vmem:[#allocation5 + $0xc0] sm:$0xff]  ;;  %v80_v29 = vld [vmem:[#allocation5 + $0xb0] sm:$0xff] }
  0x33   :  { %603 = vmatpush3.msra.mxu1 %v93_v9  ;;  %130 = vmatpush1.msra.mxu0 %v94_v14  ;;  %v72_v30 = vld [vmem:[#allocation5 + $0x70] sm:$0xff]  ;;  %v79_v31 = vld [vmem:[#allocation5 + $0xa8] sm:$0xff]  ;;  %v77_v32 = vld [vmem:[#allocation5 + $0x98] sm:$0xff] }
  0x34   :  { %604 = vmatprep.subr.mxu1 %v90_v12  ;;  %626 = vmatprep.mubr.f32.mxu1 %v821_v16  ;;  %v69_v33 = vld [vmem:[#allocation5 + $0x58] sm:$0xff]  ;;  %v76_v34 = vld [vmem:[#allocation5 + $0x90] sm:$0xff]  ;;  %v74_v35 = vld [vmem:[#allocation5 + $0x80] sm:$0xff] }
  0x35   :  { %605 = vmatpush3.msra.mxu1 %v90_v12  ;;  %131 = vmatprep.subr.mxu0 %v92_v17  ;;  %v66_v36 = vld [vmem:[#allocation5 + $0x40] sm:$0xff]  ;;  %v73_v37 = vld [vmem:[#allocation5 + $0x78] sm:$0xff]  ;;  %v71_v38 = vld [vmem:[#allocation5 + $0x68] sm:$0xff] }
  0x36   :  { %606 = vmatprep.subr.mxu1 %v87_v15  ;;  %132 = vmatpush1.msra.mxu0 %v91_v19  ;;  %v63_v39 = vld [vmem:[#allocation5 + $0x28] sm:$0xff]  ;;  %v70_v40 = vld [vmem:[#allocation5 + $0x60] sm:$0xff]  ;;  %v68_v41 = vld [vmem:[#allocation5 + $0x50] sm:$0xff] }
  0x37   :  { %607 = vmatpush3.msra.mxu1 %v87_v15  ;;  %133 = vmatprep.subr.mxu0 %v89_v20  ;;  %v60_v42 = vld [vmem:[#allocation5 + $0x10] sm:$0xff]  ;;  %v67_v43 = vld [vmem:[#allocation5 + $0x48] sm:$0xff]  ;;  %v65_v44 = vld [vmem:[#allocation5 + $0x38] sm:$0xff] }
  0x38   :  { %608 = vmatprep.subr.mxu1 %v84_v18  ;;  %134 = vmatpush1.msra.mxu0 %v88_v22  ;;  %v57_v45 = vld [vmem:[#allocation2 + $0x8] sm:$0xff]  ;;  %v64_v46 = vld [vmem:[#allocation5 + $0x30] sm:$0xff]  ;;  %v62_v47 = vld [vmem:[#allocation5 + $0x20] sm:$0xff] }
  0x39   :  { %609 = vmatpush3.msra.mxu1 %v84_v18  ;;  %135 = vmatprep.subr.mxu0 %v86_v23  ;;  %v61_v48 = vld [vmem:[#allocation5 + $0x18] sm:$0xff]  ;;  %v59_v49 = vld [vmem:[#allocation5 + $0x8] sm:$0xff]  ;;  %v58_v50 = vld [vmem:[#allocation5] sm:$0xff] }
  0x3a   :  { %610 = vmatprep.subr.mxu1 %v81_v21  ;;  %136 = vmatpush1.msra.mxu0 %v85_v25  ;;  %v342_v51 = vld [vmem:[#allocation5 + $0x2f0] sm:$0xff]  ;;  %v341_v52 = vld [vmem:[#allocation5 + $0x2e8] sm:$0xff]  ;;  %v343_v53 = vld [vmem:[#allocation5 + $0x2f8] sm:$0xff] }
  0x3b   :  { %611 = vmatpush3.msra.mxu1 %v81_v21  ;;  %137 = vmatprep.subr.mxu0 %v83_v26  ;;  %v339_v54 = vld [vmem:[#allocation5 + $0x2d8] sm:$0xff]  ;;  %v338_v55 = vld [vmem:[#allocation5 + $0x2d0] sm:$0xff]  ;;  %v340_v56 = vld [vmem:[#allocation5 + $0x2e0] sm:$0xff] }
  0x3c   :  { %612 = vmatprep.subr.mxu1 %v78_v24  ;;  %138 = vmatpush1.msra.mxu0 %v82_v28  ;;  %v336_v57 = vld [vmem:[#allocation5 + $0x2c0] sm:$0xff]  ;;  %v335_v58 = vld [vmem:[#allocation5 + $0x2b8] sm:$0xff]  ;;  %v337_v59 = vld [vmem:[#allocation5 + $0x2c8] sm:$0xff] }
  0x3d   :  { %613 = vmatpush3.msra.mxu1 %v78_v24  ;;  %139 = vmatprep.subr.mxu0 %v80_v29  ;;  %v333_v60 = vld [vmem:[#allocation5 + $0x2a8] sm:$0xff]  ;;  %v332_v61 = vld [vmem:[#allocation5 + $0x2a0] sm:$0xff]  ;;  %v334_v62 = vld [vmem:[#allocation5 + $0x2b0] sm:$0xff] }
  0x3e   :  { %614 = vmatprep.subr.mxu1 %v75_v27  ;;  %140 = vmatpush1.msra.mxu0 %v79_v31  ;;  %v330_v63 = vld [vmem:[#allocation5 + $0x290] sm:$0xff]  ;;  %v329_v1 = vld [vmem:[#allocation5 + $0x288] sm:$0xff]  ;;  %v331_v2 = vld [vmem:[#allocation5 + $0x298] sm:$0xff] }
  0x3f   :  { %615 = vmatpush3.msra.mxu1 %v75_v27  ;;  %141 = vmatprep.subr.mxu0 %v77_v32  ;;  %v327_v3 = vld [vmem:[#allocation5 + $0x278] sm:$0xff]  ;;  %v326_v4 = vld [vmem:[#allocation5 + $0x270] sm:$0xff]  ;;  %v328_v5 = vld [vmem:[#allocation5 + $0x280] sm:$0xff] }
  0x40   :  { %616 = vmatprep.subr.mxu1 %v72_v30  ;;  %142 = vmatpush1.msra.mxu0 %v76_v34  ;;  %v324_v6 = vld [vmem:[#allocation5 + $0x260] sm:$0xff]  ;;  %v323_v7 = vld [vmem:[#allocation5 + $0x258] sm:$0xff]  ;;  %v325_v8 = vld [vmem:[#allocation5 + $0x268] sm:$0xff] }
  0x41   :  { %617 = vmatpush3.msra.mxu1 %v72_v30  ;;  %143 = vmatprep.subr.mxu0 %v74_v35  ;;  %v321_v9 = vld [vmem:[#allocation5 + $0x248] sm:$0xff]  ;;  %v320_v10 = vld [vmem:[#allocation5 + $0x240] sm:$0xff]  ;;  %v322_v11 = vld [vmem:[#allocation5 + $0x250] sm:$0xff] }
  0x42   :  { %618 = vmatprep.subr.mxu1 %v69_v33  ;;  %144 = vmatpush1.msra.mxu0 %v73_v37  ;;  %v318_v12 = vld [vmem:[#allocation5 + $0x230] sm:$0xff]  ;;  %v317_v13 = vld [vmem:[#allocation5 + $0x228] sm:$0xff]  ;;  %v319_v14 = vld [vmem:[#allocation5 + $0x238] sm:$0xff] }
  0x43   :  { %619 = vmatpush3.msra.mxu1 %v69_v33  ;;  %145 = vmatprep.subr.mxu0 %v71_v38  ;;  %v315_v15 = vld [vmem:[#allocation5 + $0x218] sm:$0xff]  ;;  %v316_v17 = vld [vmem:[#allocation5 + $0x220] sm:$0xff]  ;;  %v313_v20 = vld [vmem:[#allocation5 + $0x208] sm:$0xff] }
  0x44   :  { %620 = vmatprep.subr.mxu1 %v66_v36  ;;  %146 = vmatpush1.msra.mxu0 %v70_v40  ;;  %v312_v18 = vld [vmem:[#allocation5 + $0x200] sm:$0xff]  ;;  %v311_v19 = vld [vmem:[#allocation5 + $0x1f8] sm:$0xff]  ;;  %v309_v21 = vld [vmem:[#allocation5 + $0x1e8] sm:$0xff] }
  0x45   :  { %621 = vmatpush3.msra.mxu1 %v66_v36  ;;  %147 = vmatprep.subr.mxu0 %v68_v41  ;;  %v308_v22 = vld [vmem:[#allocation5 + $0x1e0] sm:$0xff]  ;;  %v310_v23 = vld [vmem:[#allocation5 + $0x1f0] sm:$0xff]  ;;  %v305_v25 = vld [vmem:[#allocation5 + $0x1c8] sm:$0xff]  ;;  %v108_v36 = vlaneseq }
  0x46   :  { %622 = vmatprep.subr.mxu1 %v63_v39  ;;  %148 = vmatpush1.msra.mxu0 %v67_v43  ;;  %v306_v24 = vld [vmem:[#allocation5 + $0x1d0] sm:$0xff]  ;;  %v307_v26 = vld [vmem:[#allocation5 + $0x1d8] sm:$0xff]  ;;  %v304_v29 = vld [vmem:[#allocation5 + $0x1c0] sm:$0xff] }
  0x47   :  { %623 = vmatpush3.msra.mxu1 %v63_v39  ;;  %149 = vmatprep.subr.mxu0 %v65_v44  ;;  %v303_v27 = vld [vmem:[#allocation5 + $0x1b8] sm:$0xff]  ;;  %v302_v28 = vld [vmem:[#allocation5 + $0x1b0] sm:$0xff]  ;;  %v300_v30 = vld [vmem:[#allocation5 + $0x1a0] sm:$0xff]  ;;  %v827_v37 = vshrl.u32 %v108_v36, 7 }
  0x48   :  { %624 = vmatprep.subr.mxu1 %v60_v42  ;;  %150 = vmatpush1.msra.mxu0 %v64_v46  ;;  %v299_v31 = vld [vmem:[#allocation5 + $0x198] sm:$0xff]  ;;  %v301_v32 = vld [vmem:[#allocation5 + $0x1a8] sm:$0xff]  ;;  %v296_v34 = vld [vmem:[#allocation5 + $0x180] sm:$0xff] }
  0x49   :  { %625 = vmatpush3.msra.mxu1 %v60_v42  ;;  %151 = vmatprep.subr.mxu0 %v62_v47  ;;  %v297_v33 = vld [vmem:[#allocation5 + $0x188] sm:$0xff]  ;;  %v298_v35 = vld [vmem:[#allocation5 + $0x190] sm:$0xff]  ;;  %v118_v38 = vsub.s32 2, %v827_v37  ;;  %v106_v39 = vld [vmem:[#allocation7] sm:$0x7] }
  0x4a   :  { %627 = vmatmul.mubr.f32.vlgmr.msra.gmra.mxu1 %v57_v45  ;;  %152 = vmatpush1.msra.mxu0 %v61_v48 }
  0x4b   :  { %153 = vmatprep.subr.mxu0 %v59_v49  ;;  %629 = vmatprep.subr.mxu1 %v343_v53  ;;  %v119_v40 = vrot.slane %v106_v39, %v118_v38 }
  0x4c   :  { %154 = vmatpush1.msra.mxu0 %v58_v50  ;;  %630 = vmatpush3.msra.mxu1 %v343_v53  ;;  %v110_v50 = vsub.s32 0, %v827_v37 }
  0x4d   :  { %188 = vmatmul.mubr.f32.vlgmr.msra.gmra.mxu0 %v821_v16  ;;  %362 = vmatprep.subr.mxu0 %v342_v51  ;;  %v314_v16 = vld [vmem:[#allocation5 + $0x210] sm:$0xff] }
  0x4e   :  { %193 = vmatprep.mubr.f32.mxu0 %v786_v0  ;;  %363 = vmatpush1.msra.mxu0 %v341_v52 }
  0x4f   :  { %364 = vmatprep.subr.mxu0 %v339_v54  ;;  %631 = vmatprep.subr.mxu1 %v340_v56 }
  0x50   :  { %365 = vmatpush1.msra.mxu0 %v338_v55  ;;  %632 = vmatpush3.msra.mxu1 %v340_v56  ;;  %v111_v55 = vrot.slane %v106_v39, %v110_v50  ;;  %v114_v56 = vsub.s32 1, %v827_v37 }
  0x51   :  { %194 = vmatmul.mubr.f32.gmra.mxu0 %v57_v45  ;;  %366 = vmatprep.subr.mxu0 %v336_v57 }
  0x52   :  { %426 = vmatprep.mubr.f32.mxu0 %v786_v0  ;;  %367 = vmatpush1.msra.mxu0 %v335_v58 }
  0x53   :  { %633 = vmatprep.subr.mxu1 %v337_v59  ;;  %368 = vmatprep.subr.mxu0 %v333_v60 }
  0x54   :  { %634 = vmatpush3.msra.mxu1 %v337_v59  ;;  %369 = vmatpush1.msra.mxu0 %v332_v61  ;;  %v115_v59 = vrot.slane %v106_v39, %v114_v56 }
  0x55   :  { %635 = vmatprep.subr.mxu1 %v334_v62  ;;  %370 = vmatprep.subr.mxu0 %v330_v63 }
  0x56   :  { %636 = vmatpush3.msra.mxu1 %v334_v62  ;;  %371 = vmatpush1.msra.mxu0 %v329_v1 }
  0x57   :  { %637 = vmatprep.subr.mxu1 %v331_v2  ;;  %372 = vmatprep.subr.mxu0 %v327_v3 }
  0x58   :  { %638 = vmatpush3.msra.mxu1 %v331_v2  ;;  %373 = vmatpush1.msra.mxu0 %v326_v4 }
  0x59   :  { %639 = vmatprep.subr.mxu1 %v328_v5  ;;  %374 = vmatprep.subr.mxu0 %v324_v6 }
  0x5a   :  { %640 = vmatpush3.msra.mxu1 %v328_v5  ;;  %375 = vmatpush1.msra.mxu0 %v323_v7 }
  0x5b   :  { %641 = vmatprep.subr.mxu1 %v325_v8  ;;  %376 = vmatprep.subr.mxu0 %v321_v9 }
  0x5c   :  { %642 = vmatpush3.msra.mxu1 %v325_v8  ;;  %377 = vmatpush1.msra.mxu0 %v320_v10  ;;  %v345_v10 = vld [vmem:[#allocation7 + $0x3] sm:$0x7] }
  0x5d   :  { %643 = vmatprep.subr.mxu1 %v322_v11  ;;  %378 = vmatprep.subr.mxu0 %v318_v12 }
  0x5e   :  { %644 = vmatpush3.msra.mxu1 %v322_v11  ;;  %379 = vmatpush1.msra.mxu0 %v317_v13  ;;  %v358_v11 = vrot.slane %v345_v10, %v118_v38 }
  0x5f   :  { %645 = vmatprep.subr.mxu1 %v319_v14  ;;  %380 = vmatprep.subr.mxu0 %v315_v15 }
  0x60   :  { %646 = vmatpush3.msra.mxu1 %v319_v14  ;;  %381 = vmatpush1.msra.mxu0 %v314_v16 }
  0x61   :  { %647 = vmatprep.subr.mxu1 %v316_v17  ;;  %382 = vmatprep.subr.mxu0 %v312_v18 }
  0x62   :  { %648 = vmatpush3.msra.mxu1 %v316_v17  ;;  %383 = vmatpush1.msra.mxu0 %v311_v19 }
  0x63   :  { %649 = vmatprep.subr.mxu1 %v313_v20  ;;  %384 = vmatprep.subr.mxu0 %v309_v21 }
  0x64   :  { %650 = vmatpush3.msra.mxu1 %v313_v20  ;;  %385 = vmatpush1.msra.mxu0 %v308_v22 }
  0x65   :  { %651 = vmatprep.subr.mxu1 %v310_v23  ;;  %386 = vmatprep.subr.mxu0 %v306_v24 }
  0x66   :  { %652 = vmatpush3.msra.mxu1 %v310_v23  ;;  %387 = vmatpush1.msra.mxu0 %v305_v25 }
  0x67   :  { %653 = vmatprep.subr.mxu1 %v307_v26  ;;  %388 = vmatprep.subr.mxu0 %v303_v27 }
  0x68   :  { %654 = vmatpush3.msra.mxu1 %v307_v26  ;;  %389 = vmatpush1.msra.mxu0 %v302_v28  ;;  %v354_v28 = vrot.slane %v345_v10, %v114_v56 }
  0x69   :  { %655 = vmatprep.subr.mxu1 %v304_v29  ;;  %390 = vmatprep.subr.mxu0 %v300_v30 }
  0x6a   :  { %656 = vmatpush3.msra.mxu1 %v304_v29  ;;  %391 = vmatpush1.msra.mxu0 %v299_v31 }
  0x6b   :  { %657 = vmatprep.subr.mxu1 %v301_v32  ;;  %392 = vmatprep.subr.mxu0 %v297_v33 }
  0x6c   :  { %658 = vmatpush3.msra.mxu1 %v301_v32  ;;  %393 = vmatpush1.msra.mxu0 %v296_v34 }
  0x6d   :  { %659 = vmatprep.subr.mxu1 %v298_v35 }
  0x6e   :  { %660 = vmatpush3.msra.mxu1 %v298_v35 }
 0x10a   :  { %v628_v41 = vpop.f32.mrf.mxu1 }
 0x10b   :  { %v272_v42 = vadd.f32 %v628_v41, %v119_v40 }
 0x10c   :  { %v266_v43 = vpop.f32.mrf.mxu1 }
 0x10d   :  { %v555_v44 = vmul.f32 -1.442695, %v272_v42  ;;  %v267_v45 = vadd.f32 %v266_v43, %v119_v40  ;;  %v189_v47 = vpop.f32.mrf.mxu0 }
 0x10e   :  { %v190_v60 = vadd.f32 %v189_v47, %v111_v55 }
 0x10f   :  { %675 = vpow2.f32 %v555_v44  ;;  %v554_v46 = vmul.f32 -1.442695, %v267_v45  ;;  %v191_v48 = vpop.f32.mrf.mxu0 }
 0x110   :  { %v275_v63 = vmax.f32 %v190_v60, 0.0  ;;  %v192_v1 = vadd.f32 %v191_v48, %v115_v59 }
 0x111   :  { %677 = vpow2.f32 %v554_v46  ;;  %v195_v54 = vpop.f32.mrf.mxu0 }
 0x112   :  { %v196_v57 = vadd.f32 %v195_v54, %v111_v55  ;;  %v289_v4 = vsub.f32 %v275_v63, %v192_v1 }
 0x113   :  { %v197_v58 = vpop.f32.mrf.mxu0 }
 0x114   :  { %v276_v61 = vmax.f32 %v196_v57, 0.0  ;;  %v198_v62 = vadd.f32 %v197_v58, %v115_v59 }
 0x116   :  { %v290_v2 = vsub.f32 %v276_v61, %v198_v62 }
 0x11c   :  { %v676_v49 = vpop.eup %675 }
 0x11d   :  { %v284_v51 = vadd.f32 1.0, %v676_v49 }
 0x11e   :  { %v678_v52 = vpop.eup %677 }
 0x11f   :  { %679 = vrcp.f32 %v284_v51  ;;  %v283_v53 = vadd.f32 1.0, %v678_v52 }
 0x121   :  { %681 = vrcp.f32 %v283_v53 }
 0x12c   :  { %v680_v3 = vpop.eup %679 }
 0x12d   :  { %v292_v6 = vmul.f32 %v680_v3, %v290_v2 }
 0x12e   :  { %v682_v5 = vpop.eup %681 }
 0x12f   :  { %v291_v7 = vmul.f32 %v682_v5, %v289_v4  ;;  %v294_v9 = vadd.f32 %v292_v6, %v198_v62 }
 0x131   :  { %v293_v8 = vadd.f32 %v291_v7, %v192_v1 }
 0x133   :  { %427 = vmatmul.mubr.f32.vlgmr.msra.gmra.mxu0 %v293_v8  ;;  %661 = vmatprep.mubr.f32.mxu1 %v293_v8 }
 0x134   :  { %662 = vmatmul.mubr.f32.vlgmr.msra.gmra.mxu1 %v294_v9  ;;  %432 = vmatprep.mubr.f32.mxu0 %v786_v0  ;;  %v350_v0 = vrot.slane %v345_v10, %v110_v50 }
 0x137   :  { %433 = vmatmul.mubr.f32.gmra.mxu0 %v294_v9 }
 0x1f3   :  { %v428_v18 = vpop.f32.mrf.mxu0 }
 0x1f4   :  { %v663_v12 = vpop.f32.mrf.mxu1  ;;  %v429_v27 = vadd.f32 %v428_v18, %v350_v0 }
 0x1f5   :  { %v511_v13 = vadd.f32 %v663_v12, %v358_v11  ;;  %v430_v20 = vpop.f32.mrf.mxu0 }
 0x1f6   :  { %v505_v14 = vpop.f32.mrf.mxu1  ;;  %v514_v31 = vmax.f32 %v429_v27, 0.0  ;;  %v431_v32 = vadd.f32 %v430_v20, %v354_v28 }
 0x1f7   :  { %v557_v15 = vmul.f32 -1.442695, %v511_v13  ;;  %v506_v16 = vadd.f32 %v505_v14, %v358_v11  ;;  %v434_v24 = vpop.f32.mrf.mxu0 }
 0x1f8   :  { %v435_v25 = vadd.f32 %v434_v24, %v350_v0  ;;  %v528_v35 = vsub.f32 %v514_v31, %v431_v32 }
 0x1f9   :  { %683 = vpow2.f32 %v557_v15  ;;  %v556_v17 = vmul.f32 -1.442695, %v506_v16  ;;  %v436_v26 = vpop.f32.mrf.mxu0 }
 0x1fa   :  { %v515_v29 = vmax.f32 %v435_v25, 0.0  ;;  %v437_v30 = vadd.f32 %v436_v26, %v354_v28 }
 0x1fb   :  { %685 = vpow2.f32 %v556_v17 }
 0x1fc   :  { %v529_v33 = vsub.f32 %v515_v29, %v437_v30 }
 0x206   :  { %v684_v19 = vpop.eup %683 }
 0x207   :  { %v523_v21 = vadd.f32 1.0, %v684_v19 }
 0x208   :  { %v686_v22 = vpop.eup %685 }
 0x209   :  { %687 = vrcp.f32 %v523_v21  ;;  %v522_v23 = vadd.f32 1.0, %v686_v22 }
 0x20b   :  { %689 = vrcp.f32 %v522_v23 }
 0x216   :  { %v688_v34 = vpop.eup %687 }
 0x217   :  { %v531_v36 = vmul.f32 %v688_v34, %v529_v33 }
 0x218   :  { %v690_v37 = vpop.eup %689 }
 0x219   :  { %v533_v38 = vadd.f32 %v531_v36, %v437_v30  ;;  %v530_v39 = vmul.f32 %v690_v37, %v528_v35 }
 0x21b   :  { %535 = vst [vmem:[#allocation8 + $0x8] sm:$0xff] %v533_v38  ;;  %v532_v40 = vadd.f32 %v530_v39, %v431_v32 }
 0x21d   :  { %534 = vst [vmem:[#allocation8] sm:$0xff] %v532_v40 }
 0x21e   :  { %762 = shalt.err (!%p759_p5)
}
 0x21f   :  { %547 = dma.vmem_to_hbm [thread:$0]  %s542_s2, 256, %s842_s3, [#allocation4], %s781_s22, %s781_s22, %s782_s23  }
 0x220   :  { %775 = dma.done.wait [#allocation4], 256  }
 0x221   :  { %776 = vsyncadd [#allocation4], 4294967040 }
 0x222   :  { %551 = vsyncpa [#allocation3], 1 }
 0x223   :  { %552 = vsyncpa [#allocation6], 1 }
 0x224   :  { %553 = vsyncpa [#allocation4], 1 }

</bundles_post_ra>
